<compile_context>
chip_gen: v7x
topology: tpu7x:2x2x1
jax: 0.10.0
libtpu: 0.0.40
codegen_flags: <defaults>
</compile_context>

<pallas_src>
import jax
import jax.numpy as jnp
from jax.experimental import pallas as pl
from jax.experimental.pallas import tpu as pltpu

OUT_NODES = 7
S_DIM = 256            # s_input feature dim
K_DIM = 64             # k_input feature dim  (S_DIM + K_DIM == 320)
H1 = 256
H2 = 64


def _cdiv(a, b):
    return -(-a // b)


def _round_up(x, m):
    return ((x + m - 1) // m) * m


def _mlp_kernel(s_ref, k_ref, w1s_ref, w1k_ref, b1_ref,
                w2_ref, b2_ref, w3_ref, b3_ref, o_ref):
    # Cast activations to bf16 in-kernel (VPU op, hides under DMA/MXU).
    s = s_ref[...].astype(jnp.bfloat16)
    k = k_ref[...].astype(jnp.bfloat16)

    # ---- input_layer: Linear(320, 256) with the concat fused away, then ReLU.
    h1 = (jnp.dot(s, w1s_ref[...], preferred_element_type=jnp.float32)
          + jnp.dot(k, w1k_ref[...], preferred_element_type=jnp.float32)
          + b1_ref[...])
    h1 = jnp.maximum(h1, 0.0)

    # ---- dense_layer: Linear(256, 64) -> dropout -> ReLU.
    # TODO(synk): dropout(p=0.5) is identity in eval mode; a training-mode mask
    # would need pltpu.prng_seed / pltpu.prng_random_bits.
    h2 = (jnp.dot(h1.astype(jnp.bfloat16), w2_ref[...],
                  preferred_element_type=jnp.float32) + b2_ref[...])
    h2 = jnp.maximum(h2, 0.0)

    # ---- output_layer: Linear(64, 7) -> softmax over the 7 classes.
    logits = (jnp.dot(h2.astype(jnp.bfloat16), w3_ref[...],
                      preferred_element_type=jnp.float32) + b3_ref[...])
    m = jnp.max(logits, axis=-1, keepdims=True)
    e = jnp.exp(logits - m)
    denom = jnp.sum(e, axis=-1, keepdims=True)
    o_ref[...] = (e / denom).astype(o_ref.dtype)          # exact normalization


def prepare_params(params):
    """Split/cast the raw f32 params once (weights stored as [in, out])."""
    w1, b1, w2, b2, w3, b3 = params
    w1s = w1[:S_DIM].astype(jnp.bfloat16)                 # [256, 256]
    w1k = w1[S_DIM:].astype(jnp.bfloat16)                 # [ 64, 256]
    return (w1s, w1k, b1.astype(jnp.float32),
            w2.astype(jnp.bfloat16), b2.astype(jnp.float32),
            w3.astype(jnp.bfloat16), b3.astype(jnp.float32))


def ensemble_model_forward(s_input, k_input, prepared_params, *, bm=2048):
    """s_input: [B, 256] f32, k_input: [B, 64] f32 -> softmax probs [B, 7] f32."""
    B = s_input.shape[0]
    w1s, w1k, b1, w2, b2, w3, b3 = prepared_params

    # Tile choice: cdiv-based split keeps batch-padding < 8 rows per step; for
    # large batches use >= 4 (even) steps so both v7x TensorCores get several
    # pipelined iterations.
    n = _cdiv(B, bm)
    if n > 1:
        n = max(n, 4)
        n += n % 2
    bm = _round_up(_cdiv(B, n), 8)
    Bp = n * bm

    if Bp != B:  # pad only when required; common aligned case is copy-free
        s_input = jnp.pad(s_input, ((0, Bp - B), (0, 0)))
        k_input = jnp.pad(k_input, ((0, Bp - B), (0, 0)))

    params_bytes = sum(int(x.size) * x.dtype.itemsize for x in prepared_params)
    cost = pl.CostEstimate(
        flops=2 * Bp * ((S_DIM + K_DIM) * H1 + H1 * H2 + H2 * OUT_NODES),
        transcendentals=Bp * OUT_NODES,
        bytes_accessed=Bp * (S_DIM + K_DIM) * 4 + Bp * OUT_NODES * 4 + params_bytes,
    )

    full = lambda shape: pl.BlockSpec(shape, lambda i: (0, 0))  # resident block

    out = pl.pallas_call(
        _mlp_kernel,
        out_shape=jax.ShapeDtypeStruct((Bp, OUT_NODES), jnp.float32),
        grid=(n,),
        in_specs=[
            pl.BlockSpec((bm, S_DIM), lambda i: (i, 0)),   # s tile (f32)
            pl.BlockSpec((bm, K_DIM), lambda i: (i, 0)),   # k tile (f32)
            full((S_DIM, H1)),                             # W1_s  (bf16)
            full((K_DIM, H1)),                             # W1_k  (bf16)
            full((1, H1)),                                 # b1    (f32)
            full((H1, H2)),                                # W2    (bf16)
            full((1, H2)),                                 # b2    (f32)
            full((H2, OUT_NODES)),                         # W3    (bf16)
            full((1, OUT_NODES)),                          # b3    (f32)
        ],
        out_specs=pl.BlockSpec((bm, OUT_NODES), lambda i: (i, 0)),
        compiler_params=pltpu.CompilerParams(
            dimension_semantics=("parallel",),
            vmem_limit_bytes=32 * 1024 * 1024),
        cost_estimate=cost,
    )(s_input, k_input, w1s, w1k, b1, w2, b2, w3, b3)

    return out[:B]


def init_params(key):
    """nn.Linear-style U(-1/sqrt(fan_in), 1/sqrt(fan_in)); weights as [in, out]."""
    def linear(key, fan_in, fan_out):
        kw, kb = jax.random.split(key)
        bound = 1.0 / jnp.sqrt(jnp.float32(fan_in))
        w = jax.random.uniform(kw, (fan_in, fan_out), jnp.float32, -bound, bound)
        b = jax.random.uniform(kb, (1, fan_out), jnp.float32, -bound, bound)
        return w, b

    k1, k2, k3 = jax.random.split(key, 3)
    w1, b1 = linear(k1, S_DIM + K_DIM, H1)   # Linear(320, 256)
    w2, b2 = linear(k2, H1, H2)              # Linear(256, 64)
    w3, b3 = linear(k3, H2, OUT_NODES)       # Linear(64, 7)
    return (w1, b1, w2, b2, w3, b3)


def _reference(s_input, k_input, params):
    """Pure-JAX f32 reference matching the PyTorch eval-mode forward."""
    w1, b1, w2, b2, w3, b3 = params
    x = jnp.concatenate([s_input, k_input], axis=1)
    h1 = jax.nn.relu(x @ w1 + b1)
    h2 = jax.nn.relu(h1 @ w2 + b2)          # dropout is identity (eval)
    return jax.nn.softmax(h2 @ w3 + b3, axis=1)


if __name__ == "__main__":
    key = jax.random.PRNGKey(0)
    kp, ks, kk = jax.random.split(key, 3)

    raw_params = init_params(kp)
    prepared = prepare_params(raw_params)

    for B in (8, 13):  # 8: tile-aligned (no padding); 13: exercises the pad path
        s_input = jax.random.normal(jax.random.fold_in(ks, B), (B, S_DIM), jnp.float32)
        k_input = jax.random.normal(jax.random.fold_in(kk, B), (B, K_DIM), jnp.float32)

        out = jax.block_until_ready(ensemble_model_forward(s_input, k_input, prepared))
        ref = _reference(s_input, k_input, raw_params)

        assert out.shape == (B, OUT_NODES)
        # bf16 matmul operands -> loosened tolerance vs f32 reference.
        assert jnp.allclose(out, ref, atol=2e-2, rtol=2e-2), "mismatch vs reference"
        assert jnp.allclose(jnp.sum(out, axis=1), 1.0, atol=1e-3), \
            "softmax rows must sum to 1"

    print("KERNEL_OK")
</pallas_src>

<mosaic_0001>
module attributes {stable_mosaic.version = 11 : i64} {
  func.func @_mlp_kernel(%arg0: i32, %arg1: memref<8x256xf32, #tpu.memory_space<vmem>>, %arg2: memref<8x64xf32, #tpu.memory_space<vmem>>, %arg3: memref<256x256xbf16, #tpu.memory_space<vmem>>, %arg4: memref<64x256xbf16, #tpu.memory_space<vmem>>, %arg5: memref<1x256xf32, #tpu.memory_space<vmem>>, %arg6: memref<256x64xbf16, #tpu.memory_space<vmem>>, %arg7: memref<1x64xf32, #tpu.memory_space<vmem>>, %arg8: memref<64x7xbf16, #tpu.memory_space<vmem>>, %arg9: memref<1x7xf32, #tpu.memory_space<vmem>>, %arg10: memref<8x7xf32, #tpu.memory_space<vmem>>) attributes {dimension_semantics = [#tpu.dimension_semantics<parallel>], iteration_bounds = array<i64: 1>, scalar_prefetch = 0 : i64, scratch_operands = 0 : i64, tpu.core_type = #tpu.core_type<tc>, window_params = [{transform_indices = @transform_0, window_bounds = array<i64: 8, 256>}, {transform_indices = @transform_1, window_bounds = array<i64: 8, 64>}, {pipeline_mode = #tpu.pipeline_mode<synchronous>, transform_indices = @transform_2, window_bounds = array<i64: 256, 256>}, {pipeline_mode = #tpu.pipeline_mode<synchronous>, transform_indices = @transform_3, window_bounds = array<i64: 64, 256>}, {pipeline_mode = #tpu.pipeline_mode<synchronous>, transform_indices = @transform_4, window_bounds = array<i64: 1, 256>}, {pipeline_mode = #tpu.pipeline_mode<synchronous>, transform_indices = @transform_5, window_bounds = array<i64: 256, 64>}, {pipeline_mode = #tpu.pipeline_mode<synchronous>, transform_indices = @transform_6, window_bounds = array<i64: 1, 64>}, {pipeline_mode = #tpu.pipeline_mode<synchronous>, transform_indices = @transform_7, window_bounds = array<i64: 64, 7>}, {pipeline_mode = #tpu.pipeline_mode<synchronous>, transform_indices = @transform_8, window_bounds = array<i64: 1, 7>}, {transform_indices = @transform_9, window_bounds = array<i64: 8, 7>}]} {
    %c0 = arith.constant 0 : index
    %c0_0 = arith.constant 0 : index
    %0 = vector.load %arg1[%c0, %c0_0] : memref<8x256xf32, #tpu.memory_space<vmem>>, vector<8x256xf32>
    %1 = arith.truncf %0 : vector<8x256xf32> to vector<8x256xbf16>
    %c0_1 = arith.constant 0 : index
    %c0_2 = arith.constant 0 : index
    %2 = vector.load %arg2[%c0_1, %c0_2] : memref<8x64xf32, #tpu.memory_space<vmem>>, vector<8x64xf32>
    %3 = arith.truncf %2 : vector<8x64xf32> to vector<8x64xbf16>
    %c0_3 = arith.constant 0 : index
    %c0_4 = arith.constant 0 : index
    %4 = vector.load %arg3[%c0_3, %c0_4] : memref<256x256xbf16, #tpu.memory_space<vmem>>, vector<256x256xbf16>
    %cst = arith.constant dense<0.000000e+00> : vector<8x256xf32>
    %5 = tpu.matmul %1, %4, %cst {dimension_numbers = #tpu.dot_dimension_numbers<[1], [0], [0], [1], [0, 0, 1, 1], [], []>} : vector<8x256xbf16>, vector<256x256xbf16>, vector<8x256xf32> -> vector<8x256xf32>
    %c0_5 = arith.constant 0 : index
    %c0_6 = arith.constant 0 : index
    %6 = vector.load %arg4[%c0_5, %c0_6] : memref<64x256xbf16, #tpu.memory_space<vmem>>, vector<64x256xbf16>
    %cst_7 = arith.constant dense<0.000000e+00> : vector<8x256xf32>
    %7 = tpu.matmul %3, %6, %cst_7 {dimension_numbers = #tpu.dot_dimension_numbers<[1], [0], [0], [1], [0, 0, 1, 1], [], []>} : vector<8x64xbf16>, vector<64x256xbf16>, vector<8x256xf32> -> vector<8x256xf32>
    %8 = arith.addf %5, %7 : vector<8x256xf32>
    %c0_8 = arith.constant 0 : index
    %c0_9 = arith.constant 0 : index
    %9 = vector.load %arg5[%c0_8, %c0_9] : memref<1x256xf32, #tpu.memory_space<vmem>>, vector<1x256xf32>
    %10 = vector.broadcast %9 : vector<1x256xf32> to vector<8x256xf32>
    %11 = arith.addf %8, %10 : vector<8x256xf32>
    %cst_10 = arith.constant 0.000000e+00 : f32
    %12 = vector.broadcast %cst_10 : f32 to vector<8x256xf32>
    %13 = arith.maximumf %11, %12 : vector<8x256xf32>
    %14 = arith.truncf %13 : vector<8x256xf32> to vector<8x256xbf16>
    %c0_11 = arith.constant 0 : index
    %c0_12 = arith.constant 0 : index
    %15 = vector.load %arg6[%c0_11, %c0_12] : memref<256x64xbf16, #tpu.memory_space<vmem>>, vector<256x64xbf16>
    %cst_13 = arith.constant dense<0.000000e+00> : vector<8x64xf32>
    %16 = tpu.matmul %14, %15, %cst_13 {dimension_numbers = #tpu.dot_dimension_numbers<[1], [0], [0], [1], [0, 0, 1, 1], [], []>} : vector<8x256xbf16>, vector<256x64xbf16>, vector<8x64xf32> -> vector<8x64xf32>
    %c0_14 = arith.constant 0 : index
    %c0_15 = arith.constant 0 : index
    %17 = vector.load %arg7[%c0_14, %c0_15] : memref<1x64xf32, #tpu.memory_space<vmem>>, vector<1x64xf32>
    %18 = vector.broadcast %17 : vector<1x64xf32> to vector<8x64xf32>
    %19 = arith.addf %16, %18 : vector<8x64xf32>
    %cst_16 = arith.constant 0.000000e+00 : f32
    %20 = vector.broadcast %cst_16 : f32 to vector<8x64xf32>
    %21 = arith.maximumf %19, %20 : vector<8x64xf32>
    %22 = arith.truncf %21 : vector<8x64xf32> to vector<8x64xbf16>
    %c0_17 = arith.constant 0 : index
    %c0_18 = arith.constant 0 : index
    %23 = vector.load %arg8[%c0_17, %c0_18] : memref<64x7xbf16, #tpu.memory_space<vmem>>, vector<64x7xbf16>
    %cst_19 = arith.constant dense<0.000000e+00> : vector<8x7xf32>
    %24 = tpu.matmul %22, %23, %cst_19 {dimension_numbers = #tpu.dot_dimension_numbers<[1], [0], [0], [1], [0, 0, 1, 1], [], []>} : vector<8x64xbf16>, vector<64x7xbf16>, vector<8x7xf32> -> vector<8x7xf32>
    %c0_20 = arith.constant 0 : index
    %c0_21 = arith.constant 0 : index
    %25 = vector.load %arg9[%c0_20, %c0_21] : memref<1x7xf32, #tpu.memory_space<vmem>>, vector<1x7xf32>
    %26 = vector.broadcast %25 : vector<1x7xf32> to vector<8x7xf32>
    %27 = arith.addf %24, %26 : vector<8x7xf32>
    %cst_22 = arith.constant dense<0xFF800000> : vector<8xf32>
    %28 = vector.multi_reduction <maximumf>, %27, %cst_22 [1] : vector<8x7xf32> to vector<8xf32>
    %29 = vector.shape_cast %28 : vector<8xf32> to vector<8x1xf32>
    %30 = vector.broadcast %29 : vector<8x1xf32> to vector<8x7xf32>
    %31 = arith.subf %27, %30 : vector<8x7xf32>
    %32 = math.exp %31 : vector<8x7xf32>
    %cst_23 = arith.constant dense<0.000000e+00> : vector<8xf32>
    %33 = vector.multi_reduction <add>, %32, %cst_23 [1] : vector<8x7xf32> to vector<8xf32>
    %34 = vector.shape_cast %33 : vector<8xf32> to vector<8x1xf32>
    %35 = vector.broadcast %34 : vector<8x1xf32> to vector<8x7xf32>
    %36 = arith.divf %32, %35 : vector<8x7xf32>
    %c0_24 = arith.constant 0 : index
    %c0_25 = arith.constant 0 : index
    %37 = vector.load %arg10[%c0_24, %c0_25] : memref<8x7xf32, #tpu.memory_space<vmem>>, vector<8x7xf32>
    tpu.vector_store %arg10[%c0_24, %c0_25], %36 {strides = array<i32>} : memref<8x7xf32, #tpu.memory_space<vmem>>, vector<8x7xf32>,
    return
  }
  func.func @transform_0(%arg0: i32) -> (i32, i32) {
    %c0_i32 = arith.constant 0 : i32
    %c0_i32_0 = arith.constant 0 : i32
    return %arg0, %c0_i32 : i32, i32
  }
  func.func @transform_1(%arg0: i32) -> (i32, i32) {
    %c0_i32 = arith.constant 0 : i32
    %c0_i32_0 = arith.constant 0 : i32
    return %arg0, %c0_i32 : i32, i32
  }
  func.func @transform_2(%arg0: i32) -> (i32, i32) {
    %c0_i32 = arith.constant 0 : i32
    %c0_i32_0 = arith.constant 0 : i32
    %c0_i32_1 = arith.constant 0 : i32
    return %c0_i32, %c0_i32_0 : i32, i32
  }
  func.func @transform_3(%arg0: i32) -> (i32, i32) {
    %c0_i32 = arith.constant 0 : i32
    %c0_i32_0 = arith.constant 0 : i32
    %c0_i32_1 = arith.constant 0 : i32
    return %c0_i32, %c0_i32_0 : i32, i32
  }
  func.func @transform_4(%arg0: i32) -> (i32, i32) {
    %c0_i32 = arith.constant 0 : i32
    %c0_i32_0 = arith.constant 0 : i32
    %c0_i32_1 = arith.constant 0 : i32
    return %c0_i32, %c0_i32_0 : i32, i32
  }
  func.func @transform_5(%arg0: i32) -> (i32, i32) {
    %c0_i32 = arith.constant 0 : i32
    %c0_i32_0 = arith.constant 0 : i32
    %c0_i32_1 = arith.constant 0 : i32
    return %c0_i32, %c0_i32_0 : i32, i32
  }
  func.func @transform_6(%arg0: i32) -> (i32, i32) {
    %c0_i32 = arith.constant 0 : i32
    %c0_i32_0 = arith.constant 0 : i32
    %c0_i32_1 = arith.constant 0 : i32
    return %c0_i32, %c0_i32_0 : i32, i32
  }
  func.func @transform_7(%arg0: i32) -> (i32, i32) {
    %c0_i32 = arith.constant 0 : i32
    %c0_i32_0 = arith.constant 0 : i32
    %c0_i32_1 = arith.constant 0 : i32
    return %c0_i32, %c0_i32_0 : i32, i32
  }
  func.func @transform_8(%arg0: i32) -> (i32, i32) {
    %c0_i32 = arith.constant 0 : i32
    %c0_i32_0 = arith.constant 0 : i32
    %c0_i32_1 = arith.constant 0 : i32
    return %c0_i32, %c0_i32_0 : i32, i32
  }
  func.func @transform_9(%arg0: i32) -> (i32, i32) {
    %c0_i32 = arith.constant 0 : i32
    %c0_i32_0 = arith.constant 0 : i32
    return %arg0, %c0_i32 : i32, i32
  }
}

</mosaic_0001>

<bundles_post_ra>
// kernel: tpu_custom_call.1
= control target key start
LH: loop header
LB: loop body
LE: loop exit
PB: predicated region body
PF: predicated region fallthrough
CT: control target
= control target key end

     0   :  { %14 = vsyncpa [#allocation3], 0  ;;  %s1115_s0 = inlined_call_operand.vmem [shape: f32[8,256], index: 0, kind: input, shape index: {}]   ;;  %s1116_s1 = inlined_call_operand.vmem [shape: f32[8,64], index: 1, kind: input, shape index: {}]   ;;  %s1117_s2 = inlined_call_operand.hbm [shape: bf16[256,256], index: 2, kind: input, shape index: {}]   ;;  %s1118_s3 = inlined_call_operand.vmem [shape: bf16[64,256], index: 3, kind: input, shape index: {}]   ;;  %s1119_s4 = inlined_call_operand.vmem [shape: f32[1,256], index: 4, kind: input, shape index: {}]   ;;  %s1120_s5 = inlined_call_operand.vmem [shape: bf16[256,64], index: 5, kind: input, shape index: {}]   ;;  %s1121_s6 = inlined_call_operand.vmem [shape: f32[1,64], index: 6, kind: input, shape index: {}]   ;;  %s1122_s7 = inlined_call_operand.vmem [shape: bf16[64,7], index: 7, kind: input, shape index: {}]   ;;  %s1123_s8 = inlined_call_operand.vmem [shape: f32[1,7], index: 8, kind: input, shape index: {}]   ;;  %s1124_s9 = inlined_call_operand.hbm [shape: f32[8,7], index: 9, kind: output, shape index: {}]  }
   0x1   :  { %15 = vsyncpa [#allocation4], 0  ;;  %s927_s30 = smov [#allocation2]   ;;  %s879_s13 = scalar_lea.hbm %s1117_s2, 4096 }
   0x2   :  { %s25_s10 = sshll.u32 %s927_s30, 4  ;;  %p880_p0 = scmp.ne.s32.totalorder %s1117_s2, %s879_s13  ;;  %s26_s10 = int_to_ptr.vmem [resolvable:$true] %s25_s10 }
   0x3   :  { %p883_p1 = scmp.lt.u32.totalorder %s879_s13, %s1117_s2 }
   0x5   :  { %p885_p2 = pnand %p883_p1, %p880_p0 }
   0x7   :  { %888 = shalt.err (!%p885_p2)
}
   0x8   :  { %s889_s18 = scalar_lea.vmem %s26_s10, 4096  ;;  %p894_p4 = scmp.lt.s32.totalorder %s26_s10, %s26_s10 }
   0x9   :  { %p890_p3 = scmp.ne.s32.totalorder %s26_s10, %s889_s18  ;;  %p895_p5 = scmp.lt.s32.totalorder %s889_s18, %s889_s18 }
   0xb   :  { %p896_p6 = por %p895_p5, %p894_p4 }
   0xd   :  { %p897_p7 = pnand %p896_p6, %p890_p3 }
   0xf   :  { %900 = shalt.err (!%p897_p7)
}
  0x10   :  { %s928_s19 = smov 128   ;;  %s929_s20 = smov 8  }
  0x11   :  { %31 = dma.hbm_to_vmem [thread:$0]  %s1117_s2, 4096, %s26_s10, [#allocation3], %s928_s19, %s928_s19, %s929_s20  }
  0x12   :  { %923 = dma.done.wait [#allocation3], 4096  }
  0x13   :  { %924 = vsyncadd [#allocation3], 4294963200  ;;  %v930_v0 = vmov 0   ;;  %v795_v1 = vld [vmem:[#allocation2 + $0x4] ss:$8 sps:$4 sm:$0xff]   ;;  %vm134_vm0 = vcmask 523264  }
  0x14   :  { %170 = vmatprep.mubr.bf16.mxu0 %v930_v0  ;;  %v797_v2 = vld [vmem:[#allocation2] ss:$8 sps:$4 sm:$0xff]   ;;  %339 = vmatprep.subr.bf16.mxu1 %v795_v1  ;;  %v798_v3 = vld [vmem:[#allocation2 + $0x14] ss:$8 sps:$4 sm:$0xff]   ;;  %v800_v4 = vld [vmem:[#allocation2 + $0x10] ss:$8 sps:$4 sm:$0xff]  }
  0x15   :  { %340 = vmatpush1.bf16.msra.mxu1 %v797_v2  ;;  %v801_v5 = vld [vmem:[#allocation2 + $0x24] ss:$8 sps:$4 sm:$0xff]   ;;  %v803_v6 = vld [vmem:[#allocation2 + $0x20] ss:$8 sps:$4 sm:$0xff]   ;;  %v804_v7 = vld [vmem:[#allocation2 + $0x34] ss:$8 sps:$4 sm:$0xff]  }
  0x16   :  { %341 = vmatprep.subr.bf16.mxu1 %v798_v3  ;;  %v806_v8 = vld [vmem:[#allocation2 + $0x30] ss:$8 sps:$4 sm:$0xff]   ;;  %v807_v9 = vld [vmem:[#allocation2 + $0x44] ss:$8 sps:$4 sm:$0xff]   ;;  %v809_v10 = vld [vmem:[#allocation2 + $0x40] ss:$8 sps:$4 sm:$0xff]  }
  0x17   :  { %v810_v11 = vld [vmem:[#allocation2 + $0x54] ss:$8 sps:$4 sm:$0xff]   ;;  %v830_v12 = vld [vmem:[%s1118_s3 + $0x4] ss:$8 sps:$4 sm:$0xff]   ;;  %v833_v13 = vld [vmem:[%s1118_s3] ss:$8 sps:$4 sm:$0xff]  }
  0x18   :  { %138 = vmatprep.subr.bf16.mxu0 %v830_v12  ;;  %v812_v14 = vld [vmem:[#allocation2 + $0x50] ss:$8 sps:$4 sm:$0xff]   ;;  %v836_v15 = vld [vmem:[%s1118_s3 + $0x14] ss:$8 sps:$4 sm:$0xff]   ;;  %v813_v17 = vld [vmem:[#allocation2 + $0x64] ss:$8 sps:$4 sm:$0xff]  }
  0x19   :  { %342 = vmatpush1.bf16.msra.mxu1 %v800_v4  ;;  %139 = vmatpush1.bf16.msra.mxu0 %v833_v13  ;;  %v839_v16 = vld [vmem:[%s1118_s3 + $0x10] ss:$8 sps:$4 sm:$0xff]   ;;  %v842_v18 = vld [vmem:[%s1118_s3 + $0x24] ss:$8 sps:$4 sm:$0xff]   ;;  %v815_v19 = vld [vmem:[#allocation2 + $0x60] ss:$8 sps:$4 sm:$0xff]   ;;  %v382_v4 = vlaneseq }
  0x1a   :  { %343 = vmatprep.subr.bf16.mxu1 %v801_v5  ;;  %140 = vmatprep.subr.bf16.mxu0 %v836_v15  ;;  %v845_v20 = vld [vmem:[%s1118_s3 + $0x20] ss:$8 sps:$4 sm:$0xff]   ;;  %v816_v21 = vld [vmem:[#allocation2 + $0x74] ss:$8 sps:$4 sm:$0xff]   ;;  %v818_v23 = vld [vmem:[#allocation2 + $0x70] ss:$8 sps:$4 sm:$0xff]  }
  0x1b   :  { %v848_v22 = vld [vmem:[%s1118_s3 + $0x34] ss:$8 sps:$4 sm:$0xff]   ;;  %v819_v24 = vld [vmem:[#allocation2 + $0x84] ss:$8 sps:$4 sm:$0xff]   ;;  %v851_v25 = vld [vmem:[%s1118_s3 + $0x30] ss:$8 sps:$4 sm:$0xff]  }
  0x1c   :  { %v52_v26 = vld [vmem:[%s1116_s1] sm:$0xff]  ;;  %v49_v27 = vld [vmem:[%s1115_s0 + $0x8] sm:$0xff]  ;;  %v822_v31 = vld [vmem:[#allocation2 + $0x94] ss:$8 sps:$4 sm:$0xff]   ;;  %v931_v63 = vmov 0.0   ;;  %v383_v5 = vshrl.u32 %v382_v4, 7 }
  0x1d   :  { %344 = vmatpush1.bf16.msra.mxu1 %v803_v6  ;;  %141 = vmatpush1.bf16.msra.mxu0 %v839_v16  ;;  %v51_v28 = vpack.c.bf16 %v49_v27, %v49_v27  ;;  %v855_v29 = vld [vmem:[%s1120_s5 + $0x40] sm:$0xff]   ;;  %v53_v32 = vpack.c.bf16 %v52_v26, %v52_v26  ;;  %v857_v34 = vld [vmem:[%s1120_s5 + $0x48] sm:$0xff]   ;;  %v824_v35 = vld [vmem:[#allocation2 + $0x90] ss:$8 sps:$4 sm:$0xff]   ;;  %vm932_vm1 = vmmov 0   ;;  %vm657_vm2 = vcmask 56320  }
  0x1e   :  { %345 = vmatprep.subr.bf16.mxu1 %v804_v7  ;;  %142 = vmatprep.subr.bf16.mxu0 %v842_v18  ;;  %v821_v30 = vld [vmem:[#allocation2 + $0x80] ss:$8 sps:$4 sm:$0xff]   ;;  %v825_v36 = vld [vmem:[#allocation2 + $0xa4] ss:$8 sps:$4 sm:$0xff]   ;;  %v859_v38 = vld [vmem:[%s1120_s5 + $0x50] sm:$0xff]   ;;  %v384_v6 = vsub.s32 0, %v383_v5 }
  0x1f   :  { %371 = vmatprep.mubr.bf16.mxu1 %v51_v28  ;;  %v856_v33 = vld [vmem:[%s1120_s5] sm:$0xff]   ;;  %v858_v37 = vld [vmem:[%s1120_s5 + $0x8] sm:$0xff]   ;;  %v860_v40 = vld [vmem:[%s1120_s5 + $0x10] sm:$0xff]  }
  0x20   :  { %v827_v39 = vld [vmem:[#allocation2 + $0xa0] ss:$8 sps:$4 sm:$0xff]   ;;  %v828_v41 = vld [vmem:[#allocation2 + $0xb4] ss:$8 sps:$4 sm:$0xff]   ;;  %v832_v43 = vld [vmem:[#allocation2 + $0xb0] ss:$8 sps:$4 sm:$0xff]  }
  0x21   :  { %346 = vmatpush1.bf16.msra.mxu1 %v806_v8  ;;  %143 = vmatpush1.bf16.msra.mxu0 %v845_v20  ;;  %v861_v42 = vld [vmem:[%s1120_s5 + $0x58] sm:$0xff]   ;;  %v834_v45 = vld [vmem:[#allocation2 + $0xc4] ss:$8 sps:$4 sm:$0xff]   ;;  %v838_v47 = vld [vmem:[#allocation2 + $0xc0] ss:$8 sps:$4 sm:$0xff]   ;;  %v388_v8 = vsub.s32 1, %v383_v5 }
  0x22   :  { %347 = vmatprep.subr.bf16.mxu1 %v807_v9  ;;  %144 = vmatprep.subr.bf16.mxu0 %v848_v22  ;;  %v862_v44 = vld [vmem:[%s1120_s5 + $0x18] sm:$0xff]   ;;  %v863_v46 = vld [vmem:[%s1120_s5 + $0x60] sm:$0xff]   ;;  %v865_v57 = vld [vmem:[%s1120_s5 + $0x68] sm:$0xff]  }
  0x23   :  { %v864_v48 = vld [vmem:[%s1120_s5 + $0x20] sm:$0xff]   ;;  %v840_v49 = vld [vmem:[#allocation2 + $0xd4] ss:$8 sps:$4 sm:$0xff]   ;;  %v844_v50 = vld [vmem:[#allocation2 + $0xd0] ss:$8 sps:$4 sm:$0xff]  }
  0x24   :  { %v846_v51 = vld [vmem:[#allocation2 + $0xe4] ss:$8 sps:$4 sm:$0xff]   ;;  %v850_v52 = vld [vmem:[#allocation2 + $0xe0] ss:$8 sps:$4 sm:$0xff]   ;;  %v852_v53 = vld [vmem:[#allocation2 + $0xf4] ss:$8 sps:$4 sm:$0xff]  }
  0x25   :  { %348 = vmatpush1.bf16.msra.mxu1 %v809_v10  ;;  %145 = vmatpush1.bf16.msra.mxu0 %v851_v25  ;;  %v854_v54 = vld [vmem:[#allocation2 + $0xf0] ss:$8 sps:$4 sm:$0xff]   ;;  %v48_v55 = vld [vmem:[%s1115_s0] sm:$0xff]  ;;  %v866_v58 = vld [vmem:[%s1120_s5 + $0x28] sm:$0xff]  }
  0x26   :  { %349 = vmatprep.subr.bf16.mxu1 %v810_v11  ;;  %749 = vmatprep.subr.bf16.mxu0 %v855_v29  ;;  %v50_v56 = vpack.c.bf16 %v48_v55, %v48_v55  ;;  %v867_v59 = vld [vmem:[%s1120_s5 + $0x70] sm:$0xff]   ;;  %v869_v61 = vld [vmem:[%s1120_s5 + $0x78] sm:$0xff]   ;;  %v380_v7 = vld [vmem:[%s1119_s4] sm:$0x3] }
  0x27   :  { %v868_v60 = vld [vmem:[%s1120_s5 + $0x30] sm:$0xff]   ;;  %v870_v62 = vld [vmem:[%s1120_s5 + $0x38] sm:$0xff]   ;;  %v385_v9 = vrot.slane %v380_v7, %v384_v6  ;;  %v389_v11 = vrot.slane %v380_v7, %v388_v8  ;;  %v871_v22 = vld [vmem:[%s1122_s7] sm:$0xff]  }
  0x28   :  { %693 = vmatmul.mubr.msk.bf16.vlgmr.msra.gmra.mrb[0].mxu0 %vm134_vm0, %v53_v32  ;;  %v873_v25 = vld [vmem:[%s1122_s7 + $0x10] sm:$0xff]   ;;  %v874_v26 = vld [vmem:[%s1122_s7 + $0x18] sm:$0xff]   ;;  %v726_v28 = vld [vmem:[%s1121_s6] ss:$0 sm:$0xff]  ;;  %s933_s6 = smov [#allocation5]  }
  0x29   :  { %350 = vmatpush1.bf16.msra.mxu1 %v812_v14  ;;  %750 = vmatpush3.bf16.msra.mxu0 %v856_v33 }
  0x2a   :  { %351 = vmatprep.subr.bf16.mxu1 %v813_v17  ;;  %751 = vmatprep.subr.bf16.mxu0 %v857_v34 }
  0x2d   :  { %352 = vmatpush1.bf16.msra.mxu1 %v815_v19  ;;  %752 = vmatpush3.bf16.msra.mxu0 %v858_v37 }
  0x2e   :  { %353 = vmatprep.subr.bf16.mxu1 %v816_v21  ;;  %753 = vmatprep.subr.bf16.mxu0 %v859_v38 }
  0x31   :  { %354 = vmatpush1.bf16.msra.mxu1 %v818_v23  ;;  %754 = vmatpush3.bf16.msra.mxu0 %v860_v40 }
  0x32   :  { %355 = vmatprep.subr.bf16.mxu1 %v819_v24  ;;  %755 = vmatprep.subr.bf16.mxu0 %v861_v42  ;;  %v872_v24 = vld [vmem:[%s1122_s7 + $0x8] sm:$0xff]   ;;  %s676_s7 = sshll.u32 %s933_s6, 4  ;;  %s677_s7 = int_to_ptr.vmem [resolvable:$true] %s676_s7 }
  0x33   :  { %p906_p9 = scmp.lt.s32.totalorder %s677_s7, %s677_s7 }
  0x35   :  { %356 = vmatpush1.bf16.msra.mxu1 %v821_v30  ;;  %756 = vmatpush3.bf16.msra.mxu0 %v862_v44 }
  0x36   :  { %357 = vmatprep.subr.bf16.mxu1 %v822_v31  ;;  %757 = vmatprep.subr.bf16.mxu0 %v863_v46 }
  0x39   :  { %358 = vmatpush1.bf16.msra.mxu1 %v824_v35  ;;  %758 = vmatpush3.bf16.msra.mxu0 %v864_v48 }
  0x3a   :  { %359 = vmatprep.subr.bf16.mxu1 %v825_v36  ;;  %759 = vmatprep.subr.bf16.mxu0 %v865_v57  ;;  %v743_v36 = vld [vmem:[%s1123_s8] ss:$0 sm:$0xff]  ;;  %s901_s8 = scalar_lea.vmem %s677_s7, 128 }
  0x3b   :  { %p902_p8 = scmp.ne.s32.totalorder %s677_s7, %s901_s8  ;;  %p907_p10 = scmp.lt.s32.totalorder %s901_s8, %s901_s8 }
  0x3d   :  { %360 = vmatpush1.bf16.msra.mxu1 %v827_v39  ;;  %760 = vmatpush3.bf16.msra.mxu0 %v866_v58  ;;  %p908_p11 = por %p907_p10, %p906_p9 }
  0x3e   :  { %361 = vmatprep.subr.bf16.mxu1 %v828_v41  ;;  %761 = vmatprep.subr.bf16.mxu0 %v867_v59 }
  0x3f   :  { %p909_p12 = pnand %p908_p11, %p902_p8 }
  0x41   :  { %362 = vmatpush1.bf16.msra.mxu1 %v832_v43  ;;  %762 = vmatpush3.bf16.msra.mxu0 %v868_v60 }
  0x42   :  { %363 = vmatprep.subr.bf16.mxu1 %v834_v45  ;;  %763 = vmatprep.subr.bf16.mxu0 %v869_v61 }
  0x45   :  { %364 = vmatpush1.bf16.msra.mxu1 %v838_v47  ;;  %764 = vmatpush3.bf16.msra.mxu0 %v870_v62 }
  0x46   :  { %365 = vmatprep.subr.bf16.mxu1 %v840_v49  ;;  %776 = vmatprep.subr.bf16.mxu0 %v931_v63 }
  0x49   :  { %366 = vmatpush1.bf16.msra.mxu1 %v844_v50 }
  0x4a   :  { %367 = vmatprep.subr.bf16.mxu1 %v846_v51 }
  0x4d   :  { %368 = vmatpush1.bf16.msra.mxu1 %v850_v52 }
  0x4e   :  { %369 = vmatprep.subr.bf16.mxu1 %v852_v53 }
  0x51   :  { %370 = vmatpush1.bf16.msra.mxu1 %v854_v54 }
  0x54   :  { %372 = vmatmul.mubr.bf16.vlgmr.msra.gmra.mrb[0].mxu1 %v50_v56 }
  0xfb   :  { %v172_v0 = vpop.f32.mrb[0].mxu0 }
  0xfc   :  { %v174_v1 = vpop.f32.mrb[1].mxu0 }
  0xfd   :  { %v176_v2 = vpop.f32.mrb[2].mxu0 }
  0xfe   :  { %v177_v3 = vpop.f32.mrb[3].mxu0 }
 0x127   :  { %v373_v10 = vpop.f32.mrb[0].mxu1 }
 0x128   :  { %v374_v12 = vadd.f32 %v373_v10, %v172_v0  ;;  %v375_v13 = vpop.f32.mrb[1].mxu1 }
 0x129   :  { %v376_v14 = vadd.f32 %v375_v13, %v174_v1  ;;  %v377_v15 = vpop.f32.mrb[2].mxu1 }
 0x12a   :  { %v392_v16 = vadd.f32 %v385_v9, %v374_v12  ;;  %v378_v17 = vpop.f32.mrb[3].mxu1 }
 0x12b   :  { %v393_v18 = vadd.f32 %v389_v11, %v376_v14 }
 0x12c   :  { %v394_v19 = vmax.f32 %v392_v16, 0.0 }
 0x12d   :  { %v395_v20 = vmax.f32 %v393_v18, 0.0 }
 0x12e   :  { %v396_v23 = vpack.c.bf16 %v394_v19, %v394_v19 }
 0x12f   :  { %v397_v21 = vpack.c.bf16 %v395_v20, %v395_v20 }
 0x131   :  { %565 = vmatprep.mubr.bf16.mxu0 %v397_v21 }
 0x132   :  { %566 = vmatmul.mubr.bf16.vlgmr.msra.gmra.mrb[4].mxu0 %v396_v23 }
 0x133   :  { %777 = vmatpush3.bf16.msra.mxu0 %v871_v22  ;;  %784 = vmatprep.mubr.msk.bf16.mxu0 %vm932_vm1, %v931_v63 }
 0x134   :  { %778 = vmatprep.subr.bf16.mxu0 %v931_v63 }
 0x137   :  { %779 = vmatpush3.bf16.msra.mxu0 %v872_v24 }
 0x138   :  { %780 = vmatprep.subr.bf16.mxu0 %v931_v63 }
 0x13b   :  { %781 = vmatpush3.bf16.msra.mxu0 %v873_v25 }
 0x13c   :  { %782 = vmatprep.subr.bf16.mxu0 %v931_v63 }
 0x13f   :  { %783 = vmatpush3.bf16.msra.mxu0 %v874_v26 }
 0x205   :  { %v765_v27 = vpop.f32.mrb[4].mxu0 }
 0x206   :  { %v766_v29 = vpop.f32.mrb[5].mxu0 }
 0x207   :  { %v767_v30 = vadd.f32 %v766_v29, %v765_v27  ;;  %v768_v31 = vpop.f32.mrb[6].mxu0 }
 0x208   :  { %v769_v32 = vpop.f32.mrb[7].mxu0 }
 0x209   :  { %v568_v33 = vadd.f32 %v767_v30, %v726_v28 }
 0x20b   :  { %v573_v34 = vmax.f32 %v568_v33, 0.0 }
 0x20d   :  { %v574_v35 = vpack.c.bf16 %v573_v34, %v573_v34 }
 0x20f   :  { %785 = vmatmul.mubr.msk.bf16.vlgmr.msra.gmra.mrb[8].mxu0 %vm134_vm0, %v574_v35 }
 0x2e2   :  { %v651_v37 = vpop.f32.mrb[8].mxu0 }
 0x2e3   :  { %v652_v38 = vadd.f32 %v743_v36, %v651_v37  ;;  %v786_v39 = vpop.f32.mrb[9].mxu0 }
 0x2e4   :  { %v654_v40 = vpop.f32.mrb[10].mxu0 }
 0x2e5   :  { %v787_v41 = vpop.f32.mrb[11].mxu0  ;;  %v658_v42 = vsel %vm657_vm2, %v652_v38, -inf }
 0x2e6   :  { %659 = vmax.xlane.f32.xlu0 %v658_v42 }
 0x373   :  { %v660_v43 = vpop.xlane.xlu0 %659 }
 0x374   :  { %v661_v44 = vsub.f32 %v652_v38, %v660_v43 }
 0x376   :  { %v662_v45 = vmul.f32 1.442695, %v661_v44 }
 0x378   :  { %875 = vpow2.f32 %v662_v45 }
 0x382   :  { %v876_v46 = vpop.eup %875 }
 0x383   :  { %v664_v47 = vsel %vm657_vm2, %v876_v46, 0.0 }
 0x384   :  { %665 = vadd.xlane.f32.xlu0 %v664_v47 }
 0x411   :  { %v666_v48 = vpop.xlane.xlu0 %665 }
 0x412   :  { %877 = vrcp.f32 %v666_v48 }
 0x41c   :  { %v878_v49 = vpop.eup %877 }
 0x41d   :  { %v668_v50 = vmul.f32 %v878_v49, %v876_v46 }
 0x41f   :  { %669 = vst.msk [vmem:[#allocation5] sm:$0xff] %vm657_vm2, %v668_v50 }
 0x420   :  { %912 = shalt.err (!%p909_p12)
}
 0x421   :  { %s913_s20 = scalar_lea.hbm %s1124_s9, 128 }
 0x422   :  { %p914_p13 = scmp.ne.s32.totalorder %s1124_s9, %s913_s20  ;;  %p917_p0 = scmp.lt.u32.totalorder %s913_s20, %s1124_s9 }
 0x424   :  { %p919_p1 = pnand %p917_p0, %p914_p13 }
 0x426   :  { %922 = shalt.err (!%p919_p1)
}
 0x427   :  { %679 = dma.vmem_to_hbm [thread:$0]  %s677_s7, 128, %s1124_s9, [#allocation4]  }
 0x428   :  { %925 = dma.done.wait [#allocation4], 128  }
 0x429   :  { %926 = vsyncadd [#allocation4], 4294967168 }
 0x42a   :  { %683 = vsyncpa [#allocation3], 1 }
 0x42b   :  { %684 = vsyncpa [#allocation4], 1 }

</bundles_post_ra>
